<compile_context>
chip_gen: v7x
topology: tpu7x:2x2x1
jax: 0.10.0
libtpu: 0.0.40
codegen_flags: <defaults>
</compile_context>

<pallas_src>
import functools

import jax
import jax.numpy as jnp
from jax import lax
from jax.experimental import pallas as pl
from jax.experimental.pallas import tpu as pltpu


def _norm_and_store(z, gamma_ref, beta_ref, o_ref, *, eps, true_h):
    """LayerNorm over the lane (hidden) axis; padded lanes carry gamma=beta=0."""
    inv_h = jnp.float32(1.0 / float(true_h))
    sum_z = jnp.sum(z, axis=-1, keepdims=True)
    sum_zz = jnp.sum(z * z, axis=-1, keepdims=True)
    mean = sum_z * inv_h
    var = jnp.maximum(sum_zz * inv_h - mean * mean, 0.0)
    inv = lax.rsqrt(var + jnp.float32(eps))

    gamma = gamma_ref[...].astype(jnp.float32)   # (1, Hp)
    beta = beta_ref[...].astype(jnp.float32)     # (1, Hp)
    scale = inv * gamma                          # (rows, Hp)
    shift = beta - mean * scale                  # (rows, Hp)
    o_ref[...] = (z * scale + shift).astype(o_ref.dtype)


def addnorm_kernel(x_ref, y_ref, gamma_ref, beta_ref, o_ref, *, eps, true_h):
    x = x_ref[...].astype(jnp.float32)
    y = y_ref[...].astype(jnp.float32)
    _norm_and_store(x + y, gamma_ref, beta_ref, o_ref, eps=eps, true_h=true_h)


def addnorm_dropout_kernel(x_ref, y_ref, m_ref, gamma_ref, beta_ref, o_ref, *,
                           eps, true_h):
    x = x_ref[...].astype(jnp.float32)
    # mask is already scaled by 1/(1-p): inverted dropout is a single multiply.
    y = y_ref[...].astype(jnp.float32) * m_ref[...].astype(jnp.float32)
    _norm_and_store(x + y, gamma_ref, beta_ref, o_ref, eps=eps, true_h=true_h)


def _round_up(n, m):
    return ((n + m - 1) // m) * m


def _pick_tile_rows(rows, hp, itemsize, has_mask):
    """Largest row tile that keeps the double-buffered working set small
    enough for every TPU generation (v7x has only 64 MiB VMEM per core)."""
    n_streams = (3 if has_mask else 2) + 1          # inputs + output
    per_row_bytes = 2 * n_streams * hp * itemsize   # x2 for double buffering
    budget = 24 * 1024 * 1024                       # conservative on v7x
    t = budget // max(per_row_bytes, 1)
    t = max(8, min(1024, (t // 8) * 8))
    t = min(t, _round_up(rows, 8))                  # don't over-pad tiny inputs
    return max(t, 8)


def addnorm(x, y, gamma, beta, *, p=0.0, eps=1e-5, key=None, tile_rows=None):
    """LayerNorm(dropout(Y) + X), LayerNorm over the last (hidden) axis."""
    B, S, H = x.shape
    R = B * S
    Hp = _round_up(max(H, 128), 128)                # lane-dense hidden dim

    has_mask = p > 0.0
    itemsize = max(jnp.dtype(x.dtype).itemsize, 4)  # f32 upper bound
    if tile_rows is None:
        tile_rows = _pick_tile_rows(R, Hp, itemsize, has_mask)
    grid_rows = pl.cdiv(R, tile_rows)
    Rp = grid_rows * tile_rows

    def pad2(a):  # (R, H) -> (Rp, Hp), zero padded
        return jnp.pad(a, ((0, Rp - R), (0, Hp - H)))

    x2 = pad2(x.reshape(R, H))
    y2 = pad2(y.reshape(R, H))
    g2 = jnp.pad(gamma.reshape(1, H), ((0, 0), (0, Hp - H)))
    b2 = jnp.pad(beta.reshape(1, H), ((0, 0), (0, Hp - H)))

    row_spec = pl.BlockSpec((tile_rows, Hp), lambda i: (i, 0))
    vec_spec = pl.BlockSpec((1, Hp), lambda i: (0, 0))

    if has_mask:
        if key is None:
            key = jax.random.PRNGKey(0)
        # TODO(synk): PyTorch's dropout RNG stream cannot be reproduced
        # bit-exactly; we use jax.random with a deterministic key instead.
        keep = jax.random.bernoulli(key, 1.0 - p, shape=(R, H))
        mask = pad2(keep.astype(y.dtype) * jnp.asarray(1.0 / (1.0 - p), y.dtype))
        kernel = functools.partial(addnorm_dropout_kernel, eps=float(eps),
                                   true_h=H)
        in_specs = [row_spec, row_spec, row_spec, vec_spec, vec_spec]
        args = (x2, y2, mask, g2, b2)
    else:
        kernel = functools.partial(addnorm_kernel, eps=float(eps), true_h=H)
        in_specs = [row_spec, row_spec, vec_spec, vec_spec]
        args = (x2, y2, g2, b2)

    out = pl.pallas_call(
        kernel,
        out_shape=jax.ShapeDtypeStruct((Rp, Hp), x.dtype),
        grid=(grid_rows,),
        in_specs=in_specs,
        out_specs=row_spec,
        compiler_params=pltpu.CompilerParams(
            dimension_semantics=("parallel",),
            vmem_limit_bytes=48 * 1024 * 1024,
        ),
    )(*args)
    return out[:R, :H].reshape(B, S, H)


def layernorm_reference(z, gamma, beta, eps=1e-5):
    z = z.astype(jnp.float32)
    mean = jnp.mean(z, axis=-1, keepdims=True)
    var = jnp.mean((z - mean) ** 2, axis=-1, keepdims=True)
    return ((z - mean) / jnp.sqrt(var + eps)) * gamma + beta


if __name__ == "__main__":
    key = jax.random.PRNGKey(0)
    kx, ky, kd = jax.random.split(key, 3)

    B, S, H = 2, 8, 32          # batch=2, seq=8, hidden=32 (normalized_shape=32)
    dropout_p = 0.1             # AddNorm(normalized_shape=32, dropout=0.1)

    x = jax.random.normal(kx, (B, S, H), dtype=jnp.float32)
    y = jax.random.normal(ky, (B, S, H), dtype=jnp.float32)

    # PyTorch default LayerNorm init: weight=1, bias=0.
    gamma = jnp.ones((H,), dtype=jnp.float32)
    beta = jnp.zeros((H,), dtype=jnp.float32)

    # 1) Eval-mode check (dropout disabled) against the pure-JAX reference.
    out_eval = addnorm(x, y, gamma, beta, p=0.0)
    jax.block_until_ready(out_eval)
    ref_eval = layernorm_reference(y + x, gamma, beta)
    assert jnp.allclose(out_eval, ref_eval, atol=1e-5, rtol=1e-5), \
        "eval-mode mismatch vs reference"

    # 2) Train-mode check with inverted dropout (mask reproduced host-side).
    out_train = addnorm(x, y, gamma, beta, p=dropout_p, key=kd)
    jax.block_until_ready(out_train)
    keep = jax.random.bernoulli(kd, 1.0 - dropout_p, shape=(B * S, H))
    y_drop = (y.reshape(B * S, H) * keep / (1.0 - dropout_p)).reshape(B, S, H)
    ref_train = layernorm_reference(y_drop + x, gamma, beta)
    assert jnp.allclose(out_train, ref_train, atol=1e-5, rtol=1e-5), \
        "train-mode mismatch vs reference"

    print("KERNEL_OK")
</pallas_src>

<mosaic_0001>
module attributes {stable_mosaic.version = 11 : i64} {
  func.func @addnorm_kernel(%arg0: i32, %arg1: memref<16x128xf32, #tpu.memory_space<vmem>>, %arg2: memref<16x128xf32, #tpu.memory_space<vmem>>, %arg3: memref<1x128xf32, #tpu.memory_space<vmem>>, %arg4: memref<1x128xf32, #tpu.memory_space<vmem>>, %arg5: memref<16x128xf32, #tpu.memory_space<vmem>>) attributes {dimension_semantics = [#tpu.dimension_semantics<parallel>], iteration_bounds = array<i64: 1>, scalar_prefetch = 0 : i64, scratch_operands = 0 : i64, tpu.core_type = #tpu.core_type<tc>, window_params = [{transform_indices = @transform_0, window_bounds = array<i64: 16, 128>}, {transform_indices = @transform_1, window_bounds = array<i64: 16, 128>}, {pipeline_mode = #tpu.pipeline_mode<synchronous>, transform_indices = @transform_2, window_bounds = array<i64: 1, 128>}, {pipeline_mode = #tpu.pipeline_mode<synchronous>, transform_indices = @transform_3, window_bounds = array<i64: 1, 128>}, {transform_indices = @transform_4, window_bounds = array<i64: 16, 128>}]} {
    %c0 = arith.constant 0 : index
    %c0_0 = arith.constant 0 : index
    %0 = vector.load %arg1[%c0, %c0_0] : memref<16x128xf32, #tpu.memory_space<vmem>>, vector<16x128xf32>
    %c0_1 = arith.constant 0 : index
    %c0_2 = arith.constant 0 : index
    %1 = vector.load %arg2[%c0_1, %c0_2] : memref<16x128xf32, #tpu.memory_space<vmem>>, vector<16x128xf32>
    %2 = arith.addf %0, %1 : vector<16x128xf32>
    %cst = arith.constant dense<0.000000e+00> : vector<16xf32>
    %3 = vector.multi_reduction <add>, %2, %cst [1] : vector<16x128xf32> to vector<16xf32>
    %4 = vector.shape_cast %3 : vector<16xf32> to vector<16x1xf32>
    %5 = arith.mulf %2, %2 : vector<16x128xf32>
    %cst_3 = arith.constant dense<0.000000e+00> : vector<16xf32>
    %6 = vector.multi_reduction <add>, %5, %cst_3 [1] : vector<16x128xf32> to vector<16xf32>
    %7 = vector.shape_cast %6 : vector<16xf32> to vector<16x1xf32>
    %cst_4 = arith.constant 3.125000e-02 : f32
    %8 = vector.broadcast %cst_4 : f32 to vector<16x1xf32>
    %9 = arith.mulf %4, %8 : vector<16x1xf32>
    %cst_5 = arith.constant 3.125000e-02 : f32
    %10 = vector.broadcast %cst_5 : f32 to vector<16x1xf32>
    %11 = arith.mulf %7, %10 : vector<16x1xf32>
    %12 = arith.mulf %9, %9 : vector<16x1xf32>
    %13 = arith.subf %11, %12 : vector<16x1xf32>
    %cst_6 = arith.constant 0.000000e+00 : f32
    %14 = vector.broadcast %cst_6 : f32 to vector<16x1xf32>
    %15 = arith.maximumf %13, %14 : vector<16x1xf32>
    %cst_7 = arith.constant 9.99999974E-6 : f32
    %16 = vector.broadcast %cst_7 : f32 to vector<16x1xf32>
    %17 = arith.addf %15, %16 : vector<16x1xf32>
    %18 = math.rsqrt %17 : vector<16x1xf32>
    %c0_8 = arith.constant 0 : index
    %c0_9 = arith.constant 0 : index
    %19 = vector.load %arg3[%c0_8, %c0_9] : memref<1x128xf32, #tpu.memory_space<vmem>>, vector<1x128xf32>
    %c0_10 = arith.constant 0 : index
    %c0_11 = arith.constant 0 : index
    %20 = vector.load %arg4[%c0_10, %c0_11] : memref<1x128xf32, #tpu.memory_space<vmem>>, vector<1x128xf32>
    %21 = vector.broadcast %18 : vector<16x1xf32> to vector<16x128xf32>
    %22 = vector.broadcast %19 : vector<1x128xf32> to vector<16x128xf32>
    %23 = arith.mulf %21, %22 : vector<16x128xf32>
    %24 = vector.broadcast %9 : vector<16x1xf32> to vector<16x128xf32>
    %25 = arith.mulf %24, %23 : vector<16x128xf32>
    %26 = vector.broadcast %20 : vector<1x128xf32> to vector<16x128xf32>
    %27 = arith.subf %26, %25 : vector<16x128xf32>
    %28 = arith.mulf %2, %23 : vector<16x128xf32>
    %29 = arith.addf %28, %27 : vector<16x128xf32>
    %c0_12 = arith.constant 0 : index
    %c0_13 = arith.constant 0 : index
    %30 = vector.load %arg5[%c0_12, %c0_13] : memref<16x128xf32, #tpu.memory_space<vmem>>, vector<16x128xf32>
    tpu.vector_store %arg5[%c0_12, %c0_13], %29 {strides = array<i32>} : memref<16x128xf32, #tpu.memory_space<vmem>>, vector<16x128xf32>,
    return
  }
  func.func @transform_0(%arg0: i32) -> (i32, i32) {
    %c0_i32 = arith.constant 0 : i32
    %c0_i32_0 = arith.constant 0 : i32
    return %arg0, %c0_i32 : i32, i32
  }
  func.func @transform_1(%arg0: i32) -> (i32, i32) {
    %c0_i32 = arith.constant 0 : i32
    %c0_i32_0 = arith.constant 0 : i32
    return %arg0, %c0_i32 : i32, i32
  }
  func.func @transform_2(%arg0: i32) -> (i32, i32) {
    %c0_i32 = arith.constant 0 : i32
    %c0_i32_0 = arith.constant 0 : i32
    %c0_i32_1 = arith.constant 0 : i32
    return %c0_i32, %c0_i32_0 : i32, i32
  }
  func.func @transform_3(%arg0: i32) -> (i32, i32) {
    %c0_i32 = arith.constant 0 : i32
    %c0_i32_0 = arith.constant 0 : i32
    %c0_i32_1 = arith.constant 0 : i32
    return %c0_i32, %c0_i32_0 : i32, i32
  }
  func.func @transform_4(%arg0: i32) -> (i32, i32) {
    %c0_i32 = arith.constant 0 : i32
    %c0_i32_0 = arith.constant 0 : i32
    return %arg0, %c0_i32 : i32, i32
  }
}

</mosaic_0001>

<bundles_post_ra>
// kernel: tpu_custom_call.1
= control target key start
LH: loop header
LB: loop body
LE: loop exit
PB: predicated region body
PF: predicated region fallthrough
CT: control target
= control target key end

     0   :  { %9 = vsyncpa [#allocation3], 0  ;;  %s284_s0 = inlined_call_operand.hbm [shape: f32[16,128], index: 0, kind: input, shape index: {}]   ;;  %s285_s1 = inlined_call_operand.hbm [shape: f32[16,128], index: 1, kind: input, shape index: {}]   ;;  %s286_s2 = inlined_call_operand.vmem [shape: f32[1,128], index: 2, kind: input, shape index: {}]   ;;  %s287_s3 = inlined_call_operand.vmem [shape: f32[1,128], index: 3, kind: input, shape index: {}]   ;;  %s288_s4 = inlined_call_operand.hbm [shape: f32[16,128], index: 4, kind: output, shape index: {}]  }
   0x1   :  { %10 = vsyncpa [#allocation6], 0 }
   0x2   :  { %11 = vsyncpa [#allocation4], 0  ;;  %s203_s15 = smov [#allocation2]   ;;  %s131_s19 = scalar_lea.hbm %s284_s0, 256 }
   0x3   :  { %s17_s16 = sshll.u32 %s203_s15, 4  ;;  %p132_p0 = scmp.ne.s32.totalorder %s284_s0, %s131_s19  ;;  %s18_s16 = int_to_ptr.vmem [resolvable:$true] %s17_s16 }
   0x4   :  { %p135_p1 = scmp.lt.u32.totalorder %s131_s19, %s284_s0 }
   0x6   :  { %p137_p2 = pnand %p135_p1, %p132_p0 }
   0x8   :  { %140 = shalt.err (!%p137_p2)
}
   0x9   :  { %s141_s24 = scalar_lea.vmem %s18_s16, 256  ;;  %p146_p4 = scmp.lt.s32.totalorder %s18_s16, %s18_s16 }
   0xa   :  { %p142_p3 = scmp.ne.s32.totalorder %s18_s16, %s141_s24  ;;  %p147_p5 = scmp.lt.s32.totalorder %s141_s24, %s141_s24 }
   0xc   :  { %p148_p6 = por %p147_p5, %p146_p4 }
   0xe   :  { %p149_p7 = pnand %p148_p6, %p142_p3 }
  0x10   :  { %152 = shalt.err (!%p149_p7)
}
  0x11   :  { %s204_s25 = smov 128   ;;  %s205_s26 = smov 8  }
  0x12   :  { %23 = dma.hbm_to_vmem [thread:$0]  %s284_s0, 256, %s18_s16, [#allocation3], %s204_s25, %s204_s25, %s205_s26  }
  0x13   :  { %s206_s29 = smov [#allocation5]   ;;  %s153_s7 = scalar_lea.hbm %s285_s1, 256 }
  0x14   :  { %s29_s30 = sshll.u32 %s206_s29, 4  ;;  %p154_p8 = scmp.ne.s32.totalorder %s285_s1, %s153_s7  ;;  %s30_s30 = int_to_ptr.vmem [resolvable:$true] %s29_s30 }
  0x15   :  { %p157_p9 = scmp.lt.u32.totalorder %s153_s7, %s285_s1 }
  0x17   :  { %p159_p10 = pnand %p157_p9, %p154_p8 }
  0x19   :  { %162 = shalt.err (!%p159_p10)
}
  0x1a   :  { %s163_s12 = scalar_lea.vmem %s30_s30, 256  ;;  %p168_p12 = scmp.lt.s32.totalorder %s30_s30, %s30_s30 }
  0x1b   :  { %p164_p11 = scmp.ne.s32.totalorder %s30_s30, %s163_s12  ;;  %p169_p13 = scmp.lt.s32.totalorder %s163_s12, %s163_s12 }
  0x1d   :  { %p170_p0 = por %p169_p13, %p168_p12 }
  0x1f   :  { %p171_p1 = pnand %p170_p0, %p164_p11 }
  0x21   :  { %174 = shalt.err (!%p171_p1)
}
  0x22   :  { %35 = dma.hbm_to_vmem [thread:$0]  %s285_s1, 256, %s30_s30, [#allocation6], %s204_s25, %s204_s25, %s205_s26  }
  0x23   :  { %197 = dma.done.wait [#allocation3], 256  }
  0x24   :  { %198 = vsyncadd [#allocation3], 4294967040 }
  0x25   :  { %199 = dma.done.wait [#allocation6], 256  }
  0x26   :  { %200 = vsyncadd [#allocation6], 4294967040  ;;  %v46_v0 = vld [vmem:[#allocation2] sm:$0xff]  ;;  %v48_v1 = vld [vmem:[#allocation5] sm:$0xff]  ;;  %s207_s17 = smov [#allocation7]  }
  0x27   :  { %v47_v2 = vld [vmem:[#allocation2 + $0x8] sm:$0xff]  ;;  %v50_v3 = vadd.f32 %v48_v1, %v46_v0  ;;  %v49_v4 = vld [vmem:[#allocation5 + $0x8] sm:$0xff]  ;;  %v120_v24 = vld [vmem:[%s286_s2] ss:$0 sm:$0xff]  ;;  %s107_s18 = sshll.u32 %s207_s17, 4  ;;  %s108_s18 = int_to_ptr.vmem [resolvable:$true] %s107_s18 }
  0x28   :  { %v51_v5 = vadd.f32 %v49_v4, %v47_v2  ;;  %v121_v27 = vld [vmem:[%s287_s3] ss:$0 sm:$0xff]  ;;  %s175_s2 = scalar_lea.vmem %s108_s18, 256  ;;  %p180_p3 = scmp.lt.s32.totalorder %s108_s18, %s108_s18 }
  0x29   :  { %52 = vadd.xlane.f32.xlu0 %v50_v3  ;;  %v56_v6 = vmul.f32 %v50_v3, %v50_v3  ;;  %p176_p2 = scmp.ne.s32.totalorder %s108_s18, %s175_s2  ;;  %p181_p4 = scmp.lt.s32.totalorder %s175_s2, %s175_s2 }
  0x2a   :  { %v57_v7 = vmul.f32 %v51_v5, %v51_v5 }
  0x2b   :  { %58 = vadd.xlane.f32.xlu1 %v56_v6  ;;  %p182_p5 = por %p181_p4, %p180_p3 }
  0x2d   :  { %54 = vadd.xlane.f32.xlu0 %v51_v5  ;;  %p183_p6 = pnand %p182_p5, %p176_p2 }
  0x2f   :  { %60 = vadd.xlane.f32.xlu1 %v57_v7 }
  0xb6   :  { %v53_v8 = vpop.xlane.xlu0 %52 }
  0xb7   :  { %v62_v9 = vmul.f32 0.03125, %v53_v8 }
  0xb8   :  { %v59_v10 = vpop.xlane.xlu1 %58 }
  0xb9   :  { %v66_v11 = vmul.f32 %v62_v9, %v62_v9  ;;  %v64_v12 = vmul.f32 0.03125, %v59_v10 }
  0xba   :  { %v55_v13 = vpop.xlane.xlu0 %54 }
  0xbb   :  { %v68_v14 = vsub.f32 %v64_v12, %v66_v11  ;;  %v63_v15 = vmul.f32 0.03125, %v55_v13 }
  0xbc   :  { %v61_v16 = vpop.xlane.xlu1 %60 }
  0xbd   :  { %v70_v17 = vmax.f32 %v68_v14, 0.0  ;;  %v67_v18 = vmul.f32 %v63_v15, %v63_v15  ;;  %v65_v19 = vmul.f32 0.03125, %v61_v16 }
  0xbf   :  { %v72_v20 = vadd.f32 1e-05, %v70_v17  ;;  %v69_v21 = vsub.f32 %v65_v19, %v67_v18 }
  0xc1   :  { %127 = vrsqrt.f32 %v72_v20  ;;  %v71_v22 = vmax.f32 %v69_v21, 0.0 }
  0xc3   :  { %v73_v23 = vadd.f32 1e-05, %v71_v22 }
  0xc5   :  { %129 = vrsqrt.f32 %v73_v23 }
  0xcb   :  { %v128_v25 = vpop.eup %127 }
  0xcc   :  { %v84_v26 = vmul.f32 %v128_v25, %v120_v24 }
  0xce   :  { %v86_v28 = vmul.f32 %v84_v26, %v62_v9  ;;  %v96_v32 = vmul.f32 %v84_v26, %v50_v3 }
  0xcf   :  { %v130_v29 = vpop.eup %129 }
  0xd0   :  { %v85_v30 = vmul.f32 %v130_v29, %v120_v24  ;;  %v94_v31 = vsub.f32 %v121_v27, %v86_v28 }
  0xd2   :  { %v87_v33 = vmul.f32 %v85_v30, %v63_v15  ;;  %v98_v34 = vadd.f32 %v96_v32, %v94_v31  ;;  %v97_v36 = vmul.f32 %v85_v30, %v51_v5 }
  0xd4   :  { %v95_v35 = vsub.f32 %v121_v27, %v87_v33  ;;  %100 = vst [vmem:[#allocation7] sm:$0xff] %v98_v34 }
  0xd6   :  { %v99_v37 = vadd.f32 %v97_v36, %v95_v35 }
  0xd8   :  { %101 = vst [vmem:[#allocation7 + $0x8] sm:$0xff] %v99_v37 }
  0xd9   :  { %186 = shalt.err (!%p183_p6)
}
  0xda   :  { %s187_s20 = scalar_lea.hbm %s288_s4, 256 }
  0xdb   :  { %p188_p7 = scmp.ne.s32.totalorder %s288_s4, %s187_s20  ;;  %p191_p8 = scmp.lt.u32.totalorder %s187_s20, %s288_s4 }
  0xdd   :  { %p193_p9 = pnand %p191_p8, %p188_p7 }
  0xdf   :  { %196 = shalt.err (!%p193_p9)
}
  0xe0   :  { %113 = dma.vmem_to_hbm [thread:$0]  %s108_s18, 256, %s288_s4, [#allocation4], %s204_s25, %s204_s25, %s205_s26  }
  0xe1   :  { %201 = dma.done.wait [#allocation4], 256  }
  0xe2   :  { %202 = vsyncadd [#allocation4], 4294967040 }
  0xe3   :  { %117 = vsyncpa [#allocation3], 1 }
  0xe4   :  { %118 = vsyncpa [#allocation6], 1 }
  0xe5   :  { %119 = vsyncpa [#allocation4], 1 }

</bundles_post_ra>
